<compile_context>
chip_gen: v7x
topology: tpu7x:2x2x1
jax: 0.10.0
libtpu: 0.0.40
codegen_flags: <defaults>
</compile_context>

<pallas_src>
import math
import functools

import jax
import jax.numpy as jnp
from jax import lax
from jax.experimental import pallas as pl
from jax.experimental.pallas import tpu as pltpu


def _round_up(a, b):
    return ((a + b - 1) // b) * b


def _tpu_generation():
    try:
        kind = jax.devices()[0].device_kind.lower()
    except Exception:
        return 6
    for g in (7, 6, 5, 4):
        if (f"v{g}" in kind) or (f"tpu{g}" in kind):
            return g
    return 6


def _layer_norm_affine(y, g_ref, b_ref, eps, out_dtype):
    # y: (tm, H) float32; g_ref/b_ref: (1, H) float32
    mean = jnp.mean(y, axis=-1, keepdims=True)
    centered = y - mean
    var = jnp.mean(centered * centered, axis=-1, keepdims=True)
    inv = lax.rsqrt(var + eps)
    return (centered * inv * g_ref[...] + b_ref[...]).astype(out_dtype)


def _mask_tail_rows(x, n_rows, tm):
    # Zero rows whose global index >= n_rows (only emitted when a ragged tail
    # exists), so the discarded OOB rows of the last block stay finite.
    row0 = pl.program_id(0) * tm
    rows = row0 + lax.broadcasted_iota(jnp.int32, (x.shape[0], 1), 0)
    return jnp.where(rows < n_rows, x, jnp.zeros_like(x))


def _adapter_kernel_lowrank(x_ref, wd_ref, wu_ref, g_ref, b_ref, o_ref, *,
                            eps, n_rows, tm, has_tail):
    # x_ref: (tm, H); wd_ref: (H, r_pad); wu_ref: (r_pad, H) [scaled by alpha/r]
    x = x_ref[...]
    if has_tail:
        x = _mask_tail_rows(x, n_rows, tm)
    # TODO(synk): nn.Dropout(p=0.1) skipped (eval-mode identity); training
    # semantics would need pltpu.prng_random_bits masking on `down`.
    down = jnp.dot(x, wd_ref[...], preferred_element_type=jnp.float32)       # (tm, r_pad)
    up = jnp.dot(down.astype(x.dtype), wu_ref[...],
                 preferred_element_type=jnp.float32)                          # (tm, H)
    y = x.astype(jnp.float32) + up                                            # residual
    o_ref[...] = _layer_norm_affine(y, g_ref, b_ref, eps, o_ref.dtype)


def _adapter_kernel_fused(x_ref, w_ref, g_ref, b_ref, o_ref, *,
                          eps, n_rows, tm, has_tail):
    # x_ref: (tm, H); w_ref: (H, H) = (alpha/r) * Wd^T @ Wu^T
    x = x_ref[...]
    if has_tail:
        x = _mask_tail_rows(x, n_rows, tm)
    up = jnp.dot(x, w_ref[...], preferred_element_type=jnp.float32)          # (tm, H)
    y = x.astype(jnp.float32) + up
    o_ref[...] = _layer_norm_affine(y, g_ref, b_ref, eps, o_ref.dtype)


def text_lora_adapter(x, wd, wu, gamma, beta, *, alpha=32, r=16,
                      eps=1e-5, tm=1024, fuse_small_h=True):
    """x: (B, S, H).
       wd: (r, H)  -- lora_down.weight (PyTorch layout, out x in)
       wu: (H, r)  -- lora_up.weight
       gamma, beta: (H,) LayerNorm affine params.
    """
    B, S, H = x.shape
    N = B * S
    dtype = x.dtype
    itemsize = jnp.dtype(dtype).itemsize
    scaling = float(alpha) / float(r)

    gen = _tpu_generation()
    num_cores = 2 if gen in (7, 4) else 1          # TensorCores sharing the grid
    sublane = max(8, 32 // max(itemsize, 1))       # 8 f32 / 16 bf16 / 32 int8

    x2 = x.reshape(N, H)
    g2 = gamma.reshape(1, H).astype(jnp.float32)
    b2 = beta.reshape(1, H).astype(jnp.float32)

    # ---- path selection (fused (H,H) weight for small hidden sizes) ----------
    fuse_threshold = 512 if gen == 6 else 256
    use_fused = fuse_small_h and H <= fuse_threshold

    if use_fused:
        w = (scaling * (wd.T.astype(jnp.float32) @ wu.T.astype(jnp.float32))
             ).astype(dtype)                                                  # (H, H)
        weight_bytes = w.size * itemsize
        flops = 2 * N * H * H
    else:
        # Zero-pad the rank dim to 128 so the intermediate is lane-dense, and
        # fold alpha/r into the up-projection weight once (resident weights).
        r_pad = _round_up(r, 128)
        wd_t = jnp.zeros((H, r_pad), dtype).at[:, :r].set(wd.T.astype(dtype))
        wu_t = jnp.zeros((r_pad, H), dtype).at[:r, :].set(
            (scaling * wu.T.astype(jnp.float32)).astype(dtype))
        weight_bytes = (wd_t.size + wu_t.size) * itemsize
        flops = 4 * N * H * r_pad

    # ---- tile-size selection --------------------------------------------------
    # Generation-aware VMEM limit (explicit, not the scoped default).
    vmem_limit = {7: 48 << 20, 6: 96 << 20, 5: 64 << 20}.get(gen, 32 << 20)
    # Per-tile-row VMEM cost: double-buffered in/out tiles in activation dtype
    # plus ~4 live (tm, H) f32 temporaries from residual + LayerNorm, plus the
    # (tm, 128) f32 low-rank intermediate.
    per_row = H * (4 * itemsize + 16) + 512
    budget = int(0.75 * vmem_limit) - 2 * weight_bytes - 16 * H
    tm_vmem_cap = max(sublane, budget // per_row)
    # Keep >= 2 grid steps per TensorCore so both v7x cores get work and the
    # DMA pipeline (prefetch i+1 / writeback i-1) actually overlaps.
    tm_steps_cap = max(sublane, -(-N // (2 * num_cores)))

    tm_eff = min(tm, tm_vmem_cap, tm_steps_cap)
    tm_eff = max(sublane, (tm_eff // sublane) * sublane)
    tm_eff = min(tm_eff, _round_up(N, sublane))

    num_blocks = -(-N // tm_eff)
    has_tail = (N % tm_eff) != 0

    # ---- specs / kernel ---------------------------------------------------------
    out_spec = pl.BlockSpec((tm_eff, H), lambda i: (i, 0))
    if use_fused:
        kernel = functools.partial(_adapter_kernel_fused, eps=eps, n_rows=N,
                                   tm=tm_eff, has_tail=has_tail)
        in_specs = [
            pl.BlockSpec((tm_eff, H), lambda i: (i, 0)),   # x rows tile
            pl.BlockSpec((H, H), lambda i: (0, 0)),        # fused W (resident)
            pl.BlockSpec((1, H), lambda i: (0, 0)),        # gamma
            pl.BlockSpec((1, H), lambda i: (0, 0)),        # beta
        ]
        operands = (x2, w, g2, b2)
    else:
        kernel = functools.partial(_adapter_kernel_lowrank, eps=eps, n_rows=N,
                                   tm=tm_eff, has_tail=has_tail)
        in_specs = [
            pl.BlockSpec((tm_eff, H), lambda i: (i, 0)),   # x rows tile
            pl.BlockSpec((H, r_pad), lambda i: (0, 0)),    # Wd^T padded (resident)
            pl.BlockSpec((r_pad, H), lambda i: (0, 0)),    # scaled Wu^T (resident)
            pl.BlockSpec((1, H), lambda i: (0, 0)),        # gamma
            pl.BlockSpec((1, H), lambda i: (0, 0)),        # beta
        ]
        operands = (x2, wd_t, wu_t, g2, b2)

    cost = pl.CostEstimate(
        flops=flops,
        transcendentals=N,                                       # one rsqrt per row
        bytes_accessed=2 * N * H * itemsize + weight_bytes + 8 * H,
    )

    out2 = pl.pallas_call(
        kernel,
        out_shape=jax.ShapeDtypeStruct((N, H), dtype),
        grid_spec=pltpu.PrefetchScalarGridSpec(
            num_scalar_prefetch=0,
            grid=(num_blocks,),
            in_specs=in_specs,
            out_specs=out_spec,
        ),
        compiler_params=pltpu.CompilerParams(
            dimension_semantics=("parallel",),
            vmem_limit_bytes=vmem_limit,
        ),
        cost_estimate=cost,
    )(*operands)

    return out2.reshape(B, S, H)


def _reference(x, wd, wu, gamma, beta, alpha=32, r=16, eps=1e-5):
    lora = (x @ wd.T) @ wu.T * (alpha / r)
    y = x + lora
    mean = y.mean(-1, keepdims=True)
    var = ((y - mean) ** 2).mean(-1, keepdims=True)
    return (y - mean) / jnp.sqrt(var + eps) * gamma + beta


if __name__ == "__main__":
    # Small shapes consistent with a RoBERTa-style adapter.
    B, S, H, R = 2, 8, 128, 16
    ALPHA = 32

    key = jax.random.PRNGKey(0)
    kx, kd, ku = jax.random.split(key, 3)

    x = jax.random.normal(kx, (B, S, H), dtype=jnp.float32)

    # Deterministic synthetic parameters.
    # lora_down: kaiming_uniform-like bound; lora_up: PyTorch init is zeros, but
    # use small nonzero values so the kernel path is actually exercised.
    bound = 1.0 / math.sqrt(H)
    wd = jax.random.uniform(kd, (R, H), minval=-bound, maxval=bound,
                            dtype=jnp.float32)                    # lora_down.weight
    wu = 0.02 * jax.random.normal(ku, (H, R), dtype=jnp.float32)  # lora_up.weight
    gamma = jnp.ones((H,), dtype=jnp.float32)                     # LayerNorm.weight
    beta = jnp.zeros((H,), dtype=jnp.float32)                     # LayerNorm.bias

    ref = _reference(x, wd, wu, gamma, beta, alpha=ALPHA, r=R)

    # Fused-weight path (small H).
    out_fused = text_lora_adapter(x, wd, wu, gamma, beta, alpha=ALPHA, r=R,
                                  fuse_small_h=True)
    out_fused = jax.block_until_ready(out_fused)
    assert out_fused.shape == (B, S, H)
    assert jnp.allclose(out_fused, ref, atol=1e-4, rtol=1e-4), float(
        jnp.max(jnp.abs(out_fused - ref)))

    # Low-rank two-matmul path (what large H would use), rank padded to 128.
    out_lr = text_lora_adapter(x, wd, wu, gamma, beta, alpha=ALPHA, r=R,
                               fuse_small_h=False)
    out_lr = jax.block_until_ready(out_lr)
    assert out_lr.shape == (B, S, H)
    assert jnp.allclose(out_lr, ref, atol=1e-4, rtol=1e-4), float(
        jnp.max(jnp.abs(out_lr - ref)))

    # Ragged-N case (N=15 not a multiple of the row tile) — exercises the
    # in-kernel tail masking instead of wrapper-side pad/slice.
    Br, Sr = 3, 5
    xr = jax.random.normal(kx, (Br, Sr, H), dtype=jnp.float32)
    ref_r = _reference(xr, wd, wu, gamma, beta, alpha=ALPHA, r=R)
    out_r = text_lora_adapter(xr, wd, wu, gamma, beta, alpha=ALPHA, r=R,
                              fuse_small_h=False)
    out_r = jax.block_until_ready(out_r)
    assert out_r.shape == (Br, Sr, H)
    assert jnp.isfinite(out_r).all()
    assert jnp.allclose(out_r, ref_r, atol=1e-4, rtol=1e-4), float(
        jnp.max(jnp.abs(out_r - ref_r)))

    # bf16 activations (dtype-aware 16-row sublane path); loose tolerance since
    # the rank-16 intermediate and the output are rounded to bf16.
    xb = x.astype(jnp.bfloat16)
    out_bf = text_lora_adapter(xb, wd, wu, gamma, beta, alpha=ALPHA, r=R,
                               fuse_small_h=False)
    out_bf = jax.block_until_ready(out_bf)
    assert out_bf.dtype == jnp.bfloat16
    assert jnp.allclose(out_bf.astype(jnp.float32), ref, atol=5e-2, rtol=5e-2), float(
        jnp.max(jnp.abs(out_bf.astype(jnp.float32) - ref)))

    print("KERNEL_OK")
</pallas_src>

<mosaic_0001>
module attributes {stable_mosaic.version = 11 : i64} {
  func.func @_adapter_kernel_fused(%arg0: i32, %arg1: memref<8x128xf32, #tpu.memory_space<vmem>>, %arg2: memref<128x128xf32, #tpu.memory_space<vmem>>, %arg3: memref<1x128xf32, #tpu.memory_space<vmem>>, %arg4: memref<1x128xf32, #tpu.memory_space<vmem>>, %arg5: memref<8x128xf32, #tpu.memory_space<vmem>>) attributes {dimension_semantics = [#tpu.dimension_semantics<parallel>], iteration_bounds = array<i64: 2>, scalar_prefetch = 0 : i64, scratch_operands = 0 : i64, tpu.core_type = #tpu.core_type<tc>, window_params = [{transform_indices = @transform_0, window_bounds = array<i64: 8, 128>}, {pipeline_mode = #tpu.pipeline_mode<synchronous>, transform_indices = @transform_1, window_bounds = array<i64: 128, 128>}, {pipeline_mode = #tpu.pipeline_mode<synchronous>, transform_indices = @transform_2, window_bounds = array<i64: 1, 128>}, {pipeline_mode = #tpu.pipeline_mode<synchronous>, transform_indices = @transform_3, window_bounds = array<i64: 1, 128>}, {transform_indices = @transform_4, window_bounds = array<i64: 8, 128>}]} {
    %c0 = arith.constant 0 : index
    %c0_0 = arith.constant 0 : index
    %0 = vector.load %arg1[%c0, %c0_0] : memref<8x128xf32, #tpu.memory_space<vmem>>, vector<8x128xf32>
    %c0_1 = arith.constant 0 : index
    %c0_2 = arith.constant 0 : index
    %1 = vector.load %arg2[%c0_1, %c0_2] : memref<128x128xf32, #tpu.memory_space<vmem>>, vector<128x128xf32>
    %cst = arith.constant dense<0.000000e+00> : vector<8x128xf32>
    %2 = tpu.matmul %0, %1, %cst {dimension_numbers = #tpu.dot_dimension_numbers<[1], [0], [0], [1], [0, 0, 1, 1], [], []>} : vector<8x128xf32>, vector<128x128xf32>, vector<8x128xf32> -> vector<8x128xf32>
    %3 = arith.addf %0, %2 : vector<8x128xf32>
    %cst_3 = arith.constant dense<0.000000e+00> : vector<8xf32>
    %4 = vector.multi_reduction <add>, %3, %cst_3 [1] : vector<8x128xf32> to vector<8xf32>
    %5 = vector.shape_cast %4 : vector<8xf32> to vector<8x1xf32>
    %cst_4 = arith.constant 1.280000e+02 : f32
    %6 = vector.broadcast %cst_4 : f32 to vector<8x1xf32>
    %7 = arith.divf %5, %6 : vector<8x1xf32>
    %8 = vector.broadcast %7 : vector<8x1xf32> to vector<8x128xf32>
    %9 = arith.subf %3, %8 : vector<8x128xf32>
    %10 = arith.mulf %9, %9 : vector<8x128xf32>
    %cst_5 = arith.constant dense<0.000000e+00> : vector<8xf32>
    %11 = vector.multi_reduction <add>, %10, %cst_5 [1] : vector<8x128xf32> to vector<8xf32>
    %12 = vector.shape_cast %11 : vector<8xf32> to vector<8x1xf32>
    %cst_6 = arith.constant 1.280000e+02 : f32
    %13 = vector.broadcast %cst_6 : f32 to vector<8x1xf32>
    %14 = arith.divf %12, %13 : vector<8x1xf32>
    %cst_7 = arith.constant 9.99999974E-6 : f32
    %15 = vector.broadcast %cst_7 : f32 to vector<8x1xf32>
    %16 = arith.addf %14, %15 : vector<8x1xf32>
    %17 = math.rsqrt %16 : vector<8x1xf32>
    %18 = vector.broadcast %17 : vector<8x1xf32> to vector<8x128xf32>
    %19 = arith.mulf %9, %18 : vector<8x128xf32>
    %c0_8 = arith.constant 0 : index
    %c0_9 = arith.constant 0 : index
    %20 = vector.load %arg3[%c0_8, %c0_9] : memref<1x128xf32, #tpu.memory_space<vmem>>, vector<1x128xf32>
    %21 = vector.broadcast %20 : vector<1x128xf32> to vector<8x128xf32>
    %22 = arith.mulf %19, %21 : vector<8x128xf32>
    %c0_10 = arith.constant 0 : index
    %c0_11 = arith.constant 0 : index
    %23 = vector.load %arg4[%c0_10, %c0_11] : memref<1x128xf32, #tpu.memory_space<vmem>>, vector<1x128xf32>
    %24 = vector.broadcast %23 : vector<1x128xf32> to vector<8x128xf32>
    %25 = arith.addf %22, %24 : vector<8x128xf32>
    %c0_12 = arith.constant 0 : index
    %c0_13 = arith.constant 0 : index
    %26 = vector.load %arg5[%c0_12, %c0_13] : memref<8x128xf32, #tpu.memory_space<vmem>>, vector<8x128xf32>
    tpu.vector_store %arg5[%c0_12, %c0_13], %25 {strides = array<i32>} : memref<8x128xf32, #tpu.memory_space<vmem>>, vector<8x128xf32>,
    return
  }
  func.func @transform_0(%arg0: i32) -> (i32, i32) {
    %c0_i32 = arith.constant 0 : i32
    %c0_i32_0 = arith.constant 0 : i32
    return %arg0, %c0_i32 : i32, i32
  }
  func.func @transform_1(%arg0: i32) -> (i32, i32) {
    %c0_i32 = arith.constant 0 : i32
    %c0_i32_0 = arith.constant 0 : i32
    %c0_i32_1 = arith.constant 0 : i32
    return %c0_i32, %c0_i32_0 : i32, i32
  }
  func.func @transform_2(%arg0: i32) -> (i32, i32) {
    %c0_i32 = arith.constant 0 : i32
    %c0_i32_0 = arith.constant 0 : i32
    %c0_i32_1 = arith.constant 0 : i32
    return %c0_i32, %c0_i32_0 : i32, i32
  }
  func.func @transform_3(%arg0: i32) -> (i32, i32) {
    %c0_i32 = arith.constant 0 : i32
    %c0_i32_0 = arith.constant 0 : i32
    %c0_i32_1 = arith.constant 0 : i32
    return %c0_i32, %c0_i32_0 : i32, i32
  }
  func.func @transform_4(%arg0: i32) -> (i32, i32) {
    %c0_i32 = arith.constant 0 : i32
    %c0_i32_0 = arith.constant 0 : i32
    return %arg0, %c0_i32 : i32, i32
  }
}

</mosaic_0001>

<bundles_post_ra>
// kernel: tpu_custom_call.1
= control target key start
LH: loop header
LB: loop body
LE: loop exit
PB: predicated region body
PF: predicated region fallthrough
CT: control target
= control target key end

     0   :  { %9 = vsyncpa [#allocation3], 0  ;;  %s1150_s0 = inlined_call_operand.hbm [shape: f32[16,128], index: 0, kind: input, shape index: {}]   ;;  %s1151_s1 = inlined_call_operand.hbm [shape: f32[128,128], index: 1, kind: input, shape index: {}]   ;;  %s1152_s2 = inlined_call_operand.hbm [shape: f32[1,128], index: 2, kind: input, shape index: {}]   ;;  %s1153_s3 = inlined_call_operand.hbm [shape: f32[1,128], index: 3, kind: input, shape index: {}]   ;;  %s1154_s4 = inlined_call_operand.hbm [shape: f32[16,128], index: 4, kind: output, shape index: {}]  }
   0x1   :  { %11 = vsyncpa [#allocation3 + $0x1], 0 }
   0x2   :  { %12 = vsyncpa [#allocation6], 0 }
   0x3   :  { %13 = vsyncpa [#allocation9], 0 }
   0x4   :  { %14 = vsyncpa [#allocation4], 0 }
   0x5   :  { %16 = vsyncpa [#allocation4 + $0x1], 0  ;;  %s888_s15 = smov 0   ;;  %s890_s16 = smov 0  }
   0x6   :  { %s892_s17 = smov 0   ;;  %s894_s18 = smov 0  }
   0x7 LB: > { %s909_s19 = sadd.s32 4294967295, %s851_s18   ;;  %s483_s20 = sadd.s32 4294967294, %s851_s18   ;;  %s851_s18 = sphi %s894_s18, %s1177_s18   ;;  %s847_s17 = sphi %s892_s17, %s1176_s17   ;;  %s843_s16 = sphi %s890_s16, %s1175_s16   ;;  %s839_s15 = sphi %s888_s15, %s1174_s15  }
   0x8   : > { %p42_p0 = scmp.ne.s32.totalorder %s843_s16, %s839_s15  ;;  %p1155_p1 = scmp.eq.s32.totalorder %s909_s19, 0 }
   0x9   : > { %p135_p3 = scmp.eq.s32.totalorder %s483_s20, 1  ;;  %p484_p5 = scmp.ge.s32.totalorder %s851_s18, 1 }
   0xa   : > { %p918_p4 = por %p1155_p1, %p42_p0  ;;  %p142_p7 = scmp.lt.s32.totalorder %s851_s18, 3 }
   0xb   : > { %p923_p6 = por %p135_p3, %p42_p0  ;;  %s853_s24 = smov [#allocation5]  }
   0xc   : > { %s1158_s21 = scalar_select %p918_p4, 1, 0 }
   0xd   : > { %s1159_s22 = scalar_select %p923_p6, 1, 0 }
   0xe   : > { %p928_p8 = pnand %p484_p5, %p142_p7  ;;  %s154_s25 = sshll.u32 %s853_s24, 4  ;;  %s932_s25 = int_to_ptr.vmem [resolvable:$true] %s154_s25 }
   0xf   : > { %s854_s27 = smov [#allocation7]   ;;  %s855_s29 = smov [#allocation8]  }
  0x10   : > { %s1160_s23 = scalar_select %p928_p8, 1, 0 }
  0x11   : > { %p595_p9 = pneg %p928_p8  ;;  %s168_s28 = sshll.u32 %s854_s27, 4  ;;  %s943_s28 = int_to_ptr.vmem [resolvable:$true] %s168_s28 }
  0x12   : > { %s945_s30 = sshll.u32 %s855_s29, 4  ;;  %s663_s7 = scalar_lea.hbm %s1151_s1, 2048  ;;  %s180_s30 = int_to_ptr.vmem [resolvable:$true] %s945_s30 }
  0x13   : > { %p939_p11 = pnand %p595_p9, %p1155_p1  ;;  %p664_p12 = scmp.ne.s32.totalorder %s1151_s1, %s663_s7 }
  0x14   : > { %p670_p5 = scmp.lt.u32.totalorder %s663_s7, %s1151_s1 }
  0x15   : > { %p955_p13 = pneg %p939_p11 }
  0x17   : > { %p666_p0 = pnand %p955_p13, %p664_p12 }
  0x19   : > { %p667_p3 = pneg %p666_p0 }
  0x1b   : > { %p672_p7 = pnand %p670_p5, %p667_p3 }
  0x1d   : > { %675 = shalt.err (!%p672_p7)
}
  0x1e   : > { %s676_s13 = scalar_lea.vmem %s932_s25, 2048  ;;  %p684_p2 = scmp.lt.s32.totalorder %s932_s25, %s932_s25 }
  0x1f   : > { %p677_p9 = scmp.ne.s32.totalorder %s932_s25, %s676_s13  ;;  %p685_p6 = scmp.lt.s32.totalorder %s676_s13, %s676_s13 }
  0x21   : > { %p679_p10 = pnand %p677_p9, %p955_p13  ;;  %p686_p12 = por %p685_p6, %p684_p2 }
  0x23   : > { %p680_p1 = pneg %p679_p10 }
  0x25   : > { %p687_p0 = pnand %p686_p12, %p680_p1 }
  0x27   : > { %690 = shalt.err (!%p687_p0)
}
  0x28   : > { %s856_s14 = smov 128   ;;  %s857_s20 = smov 8  }
  0x29   : > { %598 = dma.hbm_to_vmem [thread:$0]  (!%p939_p11), %s1151_s1, 2048, %s932_s25, [#allocation6], %s856_s14, %s856_s14, %s857_s20  }
  0x2a   : > { %s691_s6 = scalar_lea.hbm %s1152_s2, 16 }
  0x2b   : > { %p692_p2 = scmp.ne.s32.totalorder %s1152_s2, %s691_s6  ;;  %p698_p10 = scmp.lt.u32.totalorder %s691_s6, %s1152_s2 }
  0x2d   : > { %p694_p1 = pnand %p692_p2, %p955_p13 }
  0x2f   : > { %p695_p6 = pneg %p694_p1 }
  0x31   : > { %p700_p3 = pnand %p698_p10, %p695_p6 }
  0x33   : > { %703 = shalt.err (!%p700_p3)
}
  0x34   : > { %s704_s25 = scalar_lea.vmem %s943_s28, 16  ;;  %s711_s12 = scalar_lea.vmem %s943_s28, 32 }
  0x35   : > { %p705_p5 = scmp.ne.s32.totalorder %s943_s28, %s704_s25  ;;  %p712_p12 = scmp.lt.s32.totalorder %s943_s28, %s943_s28 }
  0x36   : > { %p713_p0 = scmp.lt.s32.totalorder %s711_s12, %s704_s25 }
  0x37   : > { %p707_p7 = pnand %p705_p5, %p955_p13 }
  0x38   : > { %p714_p2 = por %p713_p0, %p712_p12 }
  0x39   : > { %p708_p9 = pneg %p707_p7 }
  0x3b   : > { %p715_p1 = pnand %p714_p2, %p708_p9 }
  0x3d   : > { %718 = shalt.err (!%p715_p1)
}
  0x3e   : > { %601 = dma.hbm_to_vmem [thread:$0]  (!%p939_p11), %s1152_s2, 16, %s943_s28, [#allocation6]  }
  0x3f   : > { %s719_s27 = scalar_lea.hbm %s1153_s3, 16 }
  0x40   : > { %p720_p6 = scmp.ne.s32.totalorder %s1153_s3, %s719_s27  ;;  %p726_p5 = scmp.lt.u32.totalorder %s719_s27, %s1153_s3 }
  0x42   : > { %p722_p10 = pnand %p720_p6, %p955_p13 }
  0x44   : > { %p723_p3 = pneg %p722_p10 }
  0x46   : > { %p728_p7 = pnand %p726_p5, %p723_p3 }
  0x48   : > { %731 = shalt.err (!%p728_p7)
}
  0x49   : > { %s732_s8 = scalar_lea.vmem %s180_s30, 16  ;;  %s739_s28 = scalar_lea.vmem %s180_s30, 32 }
  0x4a   : > { %p733_p9 = scmp.ne.s32.totalorder %s180_s30, %s732_s8  ;;  %p740_p2 = scmp.lt.s32.totalorder %s180_s30, %s180_s30 }
  0x4b   : > { %p741_p1 = scmp.lt.s32.totalorder %s739_s28, %s732_s8 }
  0x4c   : > { %p735_p12 = pnand %p733_p9, %p955_p13 }
  0x4d   : > { %p742_p4 = por %p741_p1, %p740_p2 }
  0x4e   : > { %p736_p0 = pneg %p735_p12 }
  0x50   : > { %p743_p8 = pnand %p742_p4, %p736_p0 }
  0x52   : > { %746 = shalt.err (!%p743_p8)
}
  0x53   : > { %604 = dma.hbm_to_vmem [thread:$0]  (!%p939_p11), %s1153_s3, 16, %s180_s30, [#allocation9]  }
  0x54   : > { %s1020_s10 = sadd.s32 1, %s851_s18   ;;  %s29_s26 = sadd.s32 1, %s847_s17 }
  0x55   : > { %s26_s25 = ssub.s32 %s851_s18, %s1020_s10  ;;  %p36_p8 = scmp.ne.s32.totalorder %s847_s17, %s843_s16 }
  0x56   : > { %p27_p4 = scmp.eq.s32.totalorder %s26_s25, 0  ;;  %p37_p13 = scmp.eq.s32.totalorder %s851_s18, 0 }
  0x57   : > { %p616_p6 = scmp.lt.s32.totalorder %s851_s18, 2  ;;  %p1163_p3 = scmp.eq.s32.totalorder %s909_s19, 1 }
  0x58   : > { %s1030_s12 = scalar_select %p27_p4, %s847_s17, %s29_s26  }
  0x59   : > { %p38_p10 = por %p37_p13, %p36_p8  ;;  %p1034_p5 = por %p1163_p3, %p36_p8 }
  0x5a   : > { %s190_s14 = sand.u32 1, %s847_s17   ;;  %s490_s20 = sshll.u32 %s851_s18, 7 }
  0x5b   : > { %s489_s30 = sshll.u32 %s190_s14, 3  ;;  %s1043_s29 = scalar_lea.hbm %s1150_s0, %s490_s20 }
  0x5c   : > { %s194_s5 = scalar_lea.vmem [#allocation2], %s489_s30  ;;  %p1045_p11 = pnand %p616_p6, %p38_p10 }
  0x5d   : > { %s201_s6 = sshll.u32 %s194_s5, 4  ;;  %s191_s8 = scalar_lea.sflag [#allocation3], %s190_s14  ;;  %s1049_s6 = int_to_ptr.vmem [resolvable:$true] %s201_s6 }
  0x5e   : > { %s747_s28 = scalar_lea.hbm %s1043_s29, 128  ;;  %p749_p9 = pneg %p1045_p11 }
  0x5f   : > { %p748_p7 = scmp.ne.s32.totalorder %s1043_s29, %s747_s28  ;;  %s752_s25 = scalar_lea.hbm %s1150_s0, 256 }
  0x60   : > { %p753_p2 = scmp.lt.u32.totalorder %s1043_s29, %s1150_s0  ;;  %p754_p1 = scmp.lt.u32.totalorder %s752_s25, %s747_s28 }
  0x61   : > { %p750_p12 = pnand %p749_p9, %p748_p7  ;;  %p756_p8 = scmp.lt.u32.totalorder %s747_s28, %s1043_s29 }
  0x62   : > { %p755_p4 = por %p754_p1, %p753_p2 }
  0x63   : > { %p751_p0 = pneg %p750_p12 }
  0x64   : > { %p757_p13 = por %p756_p8, %p755_p4 }
  0x66   : > { %p758_p6 = pnand %p757_p13, %p751_p0 }
  0x68   : > { %761 = shalt.err (!%p758_p6)
}
  0x69   : > { %s762_s14 = scalar_lea.vmem %s1049_s6, 128  ;;  %s858_s30 = smov [#allocation2]  }
  0x6a   : > { %p763_p10 = scmp.ne.s32.totalorder %s1049_s6, %s762_s14  ;;  %s767_s24 = sshll.u32 %s858_s30, 4  ;;  %s768_s24 = int_to_ptr.vmem [resolvable:$false] %s767_s24 }
  0x6b   : > { %s769_s27 = scalar_lea.vmem %s768_s24, 256  ;;  %p770_p12 = scmp.lt.s32.totalorder %s1049_s6, %s768_s24 }
  0x6c   : > { %p765_p3 = pnand %p763_p10, %p749_p9  ;;  %p771_p2 = scmp.lt.s32.totalorder %s769_s27, %s762_s14 }
  0x6e   : > { %p766_p7 = pneg %p765_p3  ;;  %p772_p1 = por %p771_p2, %p770_p12 }
  0x70   : > { %p773_p4 = pnand %p772_p1, %p766_p7 }
  0x72   : > { %776 = shalt.err (!%p773_p4)
}
  0x73   : > { %608 = dma.hbm_to_vmem [thread:$0]  (!%p1045_p11), %s1043_s29, 128, %s1049_s6, %s191_s8  }
  0x74   : > { %p1166_p0 = scmp.ne.s32.totalorder %s1160_s23, 0 }
  0x75   : > { %s1079_s5 = sand.u32 (!%p1166_p0), 1, %s843_s16   ;;  %p1167_p9 = scmp.ne.s32.totalorder (!%p1166_p0), %s1158_s21, 0 }
  0x76   : > { %210 = sbr.rel (%p1166_p0) target bundleno = 707 (0x2c3), region = 36  ;;  %s492_s28 = sshll.u32 (!%p1166_p0), %s1079_s5, 3 }
  0x77   : > { %s213_s9 = scalar_lea.sflag (!%p1166_p0), [#allocation3], %s1079_s5  ;;  %s1085_s11 = scalar_lea.vmem (!%p1166_p0), [#allocation2], %s492_s28 }
  0x7d   : > { %822 = dma.done.wait (%p1167_p9), %s213_s9, 128  }
  0x7e   : > { %824 = vsyncadd (%p1167_p9), %s213_s9, 4294967168  ;;  %p1168_p11 = scmp.eq.s32.totalorder %s909_s19, 0 }
  0x80   : > { %826 = dma.done.wait (%p1168_p11), [#allocation6], 2064   ;;  %p1169_p8 = pmov %p1168_p11 }
  0x82   : > { %828 = vsyncadd (%p1169_p8), [#allocation6], 4294965232  ;;  %p1170_p13 = pmov %p1169_p8 }
  0x83   : > { %p1171_p6 = pmov %p1169_p8 }
  0x84   : > { %830 = dma.done.wait (%p1170_p13), [#allocation9], 16  }
  0x85   : > { %832 = vsyncadd (%p1171_p6), [#allocation9], 4294967280  ;;  %v859_v0 = vmov 0.0|0.0   ;;  %vm860_vm0 = vmmov 0   ;;  %v861_v1 = vmov 0.0   ;;  %v254_v2 = vld [vmem:[#allocation5] sm:$0xff] }
  0x86   : > { %555 = vmatprep.subr.bf16.mxu0 %v859_v0  ;;  %552 = vmatprep.mubr.msk.f32.mxu0 %vm860_vm0, %v861_v1  ;;  %v255_v3 = vld [vmem:[#allocation5 + $0x8] sm:$0xff]  ;;  %v256_v4 = vld [vmem:[#allocation5 + $0x10] sm:$0xff]  ;;  %v257_v6 = vld [vmem:[#allocation5 + $0x18] sm:$0xff]  ;;  %s500_s21 = sshll.u32 %s909_s19, 7  ;;  %s252_s23 = scalar_lea.vmem [#allocation10], %s492_s28 }
  0x87   : > { %v556_v5 = vpack.c.bf16 %v255_v3, %v254_v2  ;;  %v559_v7 = vpack.c.bf16 %v257_v6, %v256_v4  ;;  %v258_v8 = vld [vmem:[#allocation5 + $0x20] sm:$0xff]  ;;  %v259_v9 = vld [vmem:[#allocation5 + $0x28] sm:$0xff]  ;;  %v260_v11 = vld [vmem:[#allocation5 + $0x30] sm:$0xff]  ;;  %s384_s29 = sshll.u32 %s252_s23, 4  ;;  %s1106_s8 = scalar_lea.hbm %s1154_s4, %s500_s21  ;;  %s1108_s29 = int_to_ptr.vmem [resolvable:$true] %s384_s29 }
  0x88   : > { %v562_v10 = vpack.c.bf16 %v259_v9, %v258_v8  ;;  %v261_v12 = vld [vmem:[#allocation5 + $0x38] sm:$0xff]  ;;  %v262_v14 = vld [vmem:[#allocation5 + $0x40] sm:$0xff]  ;;  %v263_v15 = vld [vmem:[#allocation5 + $0x48] sm:$0xff]  ;;  %s371_s25 = scalar_lea.sflag [#allocation4], %s1079_s5  ;;  %s777_s26 = scalar_lea.vmem %s1108_s29, 128 }
  0x89   : > { %557 = vmatpush3.bf16.msra.mxu0 %v556_v5  ;;  %v565_v13 = vpack.c.bf16 %v261_v12, %v260_v11  ;;  %v568_v16 = vpack.c.bf16 %v263_v15, %v262_v14  ;;  %v264_v17 = vld [vmem:[#allocation5 + $0x50] sm:$0xff]  ;;  %v265_v18 = vld [vmem:[#allocation5 + $0x58] sm:$0xff]  ;;  %v266_v20 = vld [vmem:[#allocation5 + $0x60] sm:$0xff]  ;;  %p778_p10 = scmp.ne.s32.totalorder %s1108_s29, %s777_s26  ;;  %s862_s19 = smov [#allocation10]  }
  0x8a   : > { %558 = vmatprep.subr.bf16.mxu0 %v859_v0  ;;  %v571_v19 = vpack.c.bf16 %v265_v18, %v264_v17  ;;  %v267_v21 = vld [vmem:[#allocation5 + $0x68] sm:$0xff]  ;;  %v268_v23 = vld [vmem:[#allocation5 + $0x70] sm:$0xff]  ;;  %v269_v24 = vld [vmem:[#allocation5 + $0x78] sm:$0xff]  ;;  %s781_s20 = sshll.u32 %s862_s19, 4  ;;  %s782_s20 = int_to_ptr.vmem [resolvable:$false] %s781_s20 }
  0x8b   : > { %v574_v22 = vpack.c.bf16 %v267_v21, %v266_v20  ;;  %v577_v25 = vpack.c.bf16 %v269_v24, %v268_v23  ;;  %v253_v26 = vld [vmem:[%s1085_s11] sm:$0xff]  ;;  %v497_v38 = vld [vmem:[#allocation7] ss:$0 sm:$0xff]  ;;  %v498_v40 = vld [vmem:[#allocation8] ss:$0 sm:$0xff]  ;;  %p779_p3 = pnand %p778_p10, %p1034_p5  ;;  %s783_s14 = scalar_lea.vmem %s782_s20, 256 }
  0x8c   : > { %p784_p12 = scmp.lt.s32.totalorder %s1108_s29, %s782_s20  ;;  %p785_p2 = scmp.lt.s32.totalorder %s783_s14, %s777_s26 }
  0x8d   : > { %560 = vmatpush3.bf16.msra.mxu0 %v559_v7  ;;  %p780_p7 = pneg %p779_p3 }
  0x8e   : > { %561 = vmatprep.subr.bf16.mxu0 %v859_v0  ;;  %p786_p1 = por %p785_p2, %p784_p12 }
  0x90   : > { %p787_p4 = pnand %p786_p1, %p780_p7 }
  0x91   : > { %563 = vmatpush3.bf16.msra.mxu0 %v562_v10 }
  0x92   : > { %564 = vmatprep.subr.bf16.mxu0 %v859_v0 }
  0x95   : > { %566 = vmatpush3.bf16.msra.mxu0 %v565_v13 }
  0x96   : > { %567 = vmatprep.subr.bf16.mxu0 %v859_v0 }
  0x99   : > { %569 = vmatpush3.bf16.msra.mxu0 %v568_v16 }
  0x9a   : > { %570 = vmatprep.subr.bf16.mxu0 %v859_v0 }
  0x9d   : > { %572 = vmatpush3.bf16.msra.mxu0 %v571_v19 }
  0x9e   : > { %573 = vmatprep.subr.bf16.mxu0 %v859_v0 }
  0xa1   : > { %575 = vmatpush3.bf16.msra.mxu0 %v574_v22 }
  0xa2   : > { %576 = vmatprep.subr.bf16.mxu0 %v859_v0 }
  0xa5   : > { %578 = vmatpush3.bf16.msra.mxu0 %v577_v25 }
  0xa8   : > { %553 = vmatmul.mubr.f32.vlgmr.msra.gmra.mrb[0].mxu0 %v253_v26 }
 0x17b   : > { %v336_v27 = vpop.f32.mrb[0].mxu0 }
 0x17c   : > { %v340_v28 = vadd.f32 %v336_v27, %v253_v26  ;;  %v554_v29 = vpop.f32.mrb[1].mxu0 }
 0x17e   : > { %341 = vadd.xlane.f32.xlu0 %v340_v28 }
 0x20b   : > { %v342_v30 = vpop.xlane.xlu0 %341 }
 0x20c   : > { %v344_v31 = vmul.f32 0.0078125, %v342_v30 }
 0x20e   : > { %v345_v32 = vsub.f32 %v340_v28, %v344_v31 }
 0x210   : > { %v346_v33 = vmul.f32 %v345_v32, %v345_v32 }
 0x212   : > { %347 = vadd.xlane.f32.xlu0 %v346_v33 }
 0x29f   : > { %v348_v34 = vpop.xlane.xlu0 %347 }
 0x2a0   : > { %v349_v35 = vmul.f32 0.0078125, %v348_v34 }
 0x2a2   : > { %v350_v36 = vadd.f32 1e-05, %v349_v35 }
 0x2a4   : > { %661 = vrsqrt.f32 %v350_v36 }
 0x2ae   : > { %v662_v37 = vpop.eup %661 }
 0x2af   : > { %v352_v39 = vmul.f32 %v662_v37, %v345_v32 }
 0x2b1   : > { %v360_v41 = vmul.f32 %v497_v38, %v352_v39 }
 0x2b3   : > { %v368_v42 = vadd.f32 %v498_v40, %v360_v41 }
 0x2b5   : > { %369 = vst [vmem:[%s252_s23] sm:$0xff] %v368_v42 }
 0x2b6   : > { %790 = shalt.err (!%p787_p4)
}
 0x2b7   : > { %s791_s30 = scalar_lea.hbm %s1106_s8, 128  ;;  %s795_s5 = scalar_lea.hbm %s1154_s4, 256 }
 0x2b8   : > { %p792_p0 = scmp.ne.s32.totalorder %s1106_s8, %s791_s30  ;;  %p796_p8 = scmp.lt.u32.totalorder %s1106_s8, %s1154_s4 }
 0x2b9   : > { %p797_p13 = scmp.lt.u32.totalorder %s795_s5, %s791_s30  ;;  %p799_p10 = scmp.lt.u32.totalorder %s791_s30, %s1106_s8 }
 0x2ba   : > { %p793_p9 = pnand %p792_p0, %p1034_p5 }
 0x2bb   : > { %p798_p6 = por %p797_p13, %p796_p8 }
 0x2bc   : > { %p794_p11 = pneg %p793_p9 }
 0x2bd   : > { %p800_p3 = por %p799_p10, %p798_p6 }
 0x2bf   : > { %p801_p7 = pnand %p800_p3, %p794_p11 }
 0x2c1   : > { %804 = shalt.err (!%p801_p7)
}
 0x2c2   : > { %593 = dma.vmem_to_hbm [thread:$0]  (%p1034_p5), %s1108_s29, 128, %s1106_s8, %s371_s25  }
 0x2c3 PF: > { %s396_s11 = sand.u32 1, %s839_s15   ;;  %p1172_p12 = scmp.ne.s32.totalorder %s1159_s22, 0 }
 0x2c4   : > { %p1173_p2 = scmp.ge.s32.totalorder %s851_s18, 2  ;;  %s397_s21 = scalar_lea.sflag [#allocation4], %s396_s11 }
 0x2c6   : > { %p610_p1 = pnand %p1173_p2, %p1172_p12 }
 0x2c8   : > { %834 = dma.done.wait (!%p610_p1), %s397_s21, 128  }
 0x2c9   : > { %836 = vsyncadd (!%p610_p1), %s397_s21, 4294967168  ;;  %p19_p4 = scmp.ge.s32.totalorder %s1020_s10, 4   ;;  %s1174_s15 = smov %s843_s16 }
 0x2ca   : > { %s1175_s16 = smov %s847_s17  ;;  %s1176_s17 = smov %s1030_s12 }
 0x2cb   : > { %s1177_s18 = smov %s1020_s10  ;;  %21 = sbr.rel (!%p19_p4) target bundleno = 7 (0x7), region = 93 }
 0x2d2   :  { %402 = vsyncpa [#allocation3], 1 }
 0x2d3   :  { %404 = vsyncpa [#allocation3 + $0x1], 1 }
 0x2d4   :  { %405 = vsyncpa [#allocation6], 1 }
 0x2d5   :  { %406 = vsyncpa [#allocation9], 1 }
 0x2d6   :  { %407 = vsyncpa [#allocation4], 1 }
 0x2d7   :  { %409 = vsyncpa [#allocation4 + $0x1], 1 }

</bundles_post_ra>
